<compile_context>
chip_gen: v6e
topology: v6e:2x2x1
jax: 0.10.0
libtpu: 0.0.40
codegen_flags: <defaults>
</compile_context>

<pallas_src>
import functools

import numpy as np
import jax
import jax.numpy as jnp
from jax.experimental import pallas as pl
from jax.experimental.pallas import tpu as pltpu


# --------------------------------------------------------------------------
# host-side constant builders
# --------------------------------------------------------------------------

def _bilinear_matrix_np(n_out, n_in):
    """Interpolation matrix matching F.interpolate(mode='bilinear', align_corners=False)."""
    scale = n_in / n_out
    dst = np.arange(n_out, dtype=np.float64)
    src = np.maximum((dst + 0.5) * scale - 0.5, 0.0)
    i0 = np.clip(np.floor(src).astype(np.int64), 0, n_in - 1)
    i1 = np.minimum(i0 + 1, n_in - 1)
    w1 = src - i0
    w0 = 1.0 - w1
    m = np.zeros((n_out, n_in), np.float64)
    np.add.at(m, (np.arange(n_out), i0), w0)
    np.add.at(m, (np.arange(n_out), i1), w1)
    return m


def _resize_matrix_padded(n_in, n_out):
    """(pad(n_in^2), pad(n_out^2)) bf16 matrix MT: out_flat = x_flat @ MT.

    Rows/cols beyond the valid flat spatial extent are zero, so padded (lane
    multiple of 128) activation levels work directly and produce zero pad lanes.
    """
    ry = _bilinear_matrix_np(n_out, n_in)
    rx = _bilinear_matrix_np(n_out, n_in)
    m = np.kron(ry, rx).T                                   # (n_in^2, n_out^2)
    rpad = (-(n_in * n_in)) % 128
    cpad = (-(n_out * n_out)) % 128
    if rpad or cpad:
        m = np.pad(m, ((0, rpad), (0, cpad)))
    return jnp.asarray(m, jnp.bfloat16)


# --------------------------------------------------------------------------
# pltpu.roll sign probe (conv lane-shifts must be exact regardless of convention)
# --------------------------------------------------------------------------

_ROLL_LIKE_JNP = None


def _roll_like_jnp_roll():
    global _ROLL_LIKE_JNP
    if _ROLL_LIKE_JNP is None:
        def k(x_ref, o_ref):
            o_ref[...] = pltpu.roll(x_ref[...], shift=1, axis=1)
        x = jnp.tile(jnp.arange(256, dtype=jnp.float32)[None, :], (8, 1))
        y = pl.pallas_call(k, out_shape=jax.ShapeDtypeStruct((8, 256), jnp.float32))(x)
        _ROLL_LIKE_JNP = bool(abs(float(y[0, 0]) - 255.0) < 0.5)
    return _ROLL_LIKE_JNP


# --------------------------------------------------------------------------
# BlockSpec helpers
# --------------------------------------------------------------------------

def _batch_spec(rest):
    zeros = (0,) * len(rest)
    return pl.BlockSpec((1,) + tuple(rest), lambda i, _z=zeros: (i,) + _z)


def _const_spec(shape):
    zeros = (0,) * len(shape)
    return pl.BlockSpec(tuple(shape), lambda i, _z=zeros: _z)


# --------------------------------------------------------------------------
# fused decoder kernel (one batch element per grid step)
# --------------------------------------------------------------------------

def _decoder_kernel(*args, treedef, n_leaves, feat, spatial, vecmap, roll_like_jnp):
    nx = len(spatial)
    x_refs = args[:nx]
    leaf_refs = args[nx:nx + n_leaves]
    out_ref = args[nx + n_leaves]
    consts = jax.tree_util.tree_unflatten(treedef, leaf_refs)
    W, VEC, RS = consts['w'], consts['vec'], consts['rs']
    f0 = feat[0]

    def vec(name, kind):
        off, c = vecmap[(name, kind)]
        return VEC[off:off + c, :]                          # (C, 1) f32, static slice

    # ---- tiny in-trace constants (boundary masks, group matrices) ----------
    mask_cache = {}

    def tap_masks(h, hwp):
        key = (h, hwp)
        if key not in mask_cache:
            p = jax.lax.broadcasted_iota(jnp.int32, (1, hwp), 1)
            y, x = p // h, p % h
            valid = p < h * h
            ms = []
            for t in range(9):
                dy, dx = t // 3 - 1, t % 3 - 1
                ok = valid & (y + dy >= 0) & (y + dy < h) & (x + dx >= 0) & (x + dx < h)
                ms.append(ok.astype(jnp.bfloat16))
            mask_cache[key] = (ms, valid.astype(jnp.float32))
        return mask_cache[key]

    gmat_cache = {}

    def gmat(c):
        # every GroupNorm in this module has 2 channels per group
        if c not in gmat_cache:
            gi = jax.lax.broadcasted_iota(jnp.int32, (c, c), 0) // 2
            gj = jax.lax.broadcasted_iota(jnp.int32, (c, c), 1) // 2
            gmat_cache[c] = (gi == gj).astype(jnp.float32)
        return gmat_cache[c]

    # ---- fused primitives (operate on (C, HWpad) values) --------------------
    def conv3x3(x, h, name):
        """3x3 conv, padding=1, as one im2col MXU matmul: (Cout,9Cin)@(9Cin,HW)."""
        hwp = x.shape[-1]
        padded = hwp != h * h
        ms, vm = tap_masks(h, hwp)
        xb = x.astype(jnp.bfloat16)
        taps = []
        for t in range(9):
            dy, dx = t // 3 - 1, t % 3 - 1
            d = dy * h + dx
            if d == 0:
                taps.append(xb * ms[t] if padded else xb)
            else:
                s = (-d) % hwp if roll_like_jnp else d % hwp
                taps.append(pltpu.roll(xb, shift=s, axis=1) * ms[t])
        patch = jnp.concatenate(taps, axis=0)               # (9*Cin, HWpad) bf16
        acc = jnp.dot(W[name][...], patch, preferred_element_type=jnp.float32)
        acc = acc + vec(name, 'b')
        if padded:
            acc = acc * vm                                  # zero the pad lanes
        return acc

    def gn_relu(acc, name, h):
        """GroupNorm (2 ch/group, biased var, eps=1e-5) + ReLU, f32, lane-sum first."""
        c, hwp = acc.shape
        hw = h * h
        padded = hwp != hw
        g = gmat(c)
        inv_n = 1.0 / (2.0 * hw)
        rsum = jnp.sum(acc, axis=1, keepdims=True)                          # (C,1)
        mean = jnp.dot(g, rsum, preferred_element_type=jnp.float32) * inv_n
        cen = acc - mean
        sq = cen * cen
        if padded:
            sq = sq * tap_masks(h, hwp)[1]
        vsum = jnp.sum(sq, axis=1, keepdims=True)                           # (C,1)
        var = jnp.dot(g, vsum, preferred_element_type=jnp.float32) * inv_n
        y = cen * (jax.lax.rsqrt(var + 1e-5) * vec(name, 'g')) + vec(name, 'be')
        return jnp.maximum(y, 0.0)

    def up_conv(x, h, name):
        return gn_relu(conv3x3(x, h, name), name, h)

    def resize(x, n_in, n_out):
        if n_in == n_out:      # F.interpolate to the same size is exactly the identity
            return x
        return jnp.dot(x.astype(jnp.bfloat16), RS['%d_%d' % (n_in, n_out)][...],
                       preferred_element_type=jnp.float32)

    def info_block(names, x1, x2, sp1, sp2, glob, spg):
        gname, rname, fname = names
        glob0 = resize(up_conv(glob, spg, gname), spg, sp1)
        loc2 = resize(x2, sp2, sp1)
        # fused res_conv1 + res_conv2 (block-diagonal weights, one matmul)
        d = jnp.concatenate([x1 - glob0, loc2 - glob0], axis=0)
        r = conv3x3(d, sp1, rname)
        res1 = jax.nn.sigmoid(r[:f0])
        res2 = jax.nn.sigmoid(r[f0:])
        fused = jnp.concatenate([x1 * res1, loc2 * res2, glob0], axis=0)
        return conv3x3(fused, sp1, fname)

    # ---- decoder forward -----------------------------------------------------
    s0, s1, s2, s3, s4 = spatial
    x0, x1, x2, x3, x4 = [r[0] for r in x_refs]             # (C, HWpad) per-batch views

    a0 = up_conv(x0, s0, 'a0')
    a12 = up_conv(jnp.concatenate([x1, x2], axis=0), s1, 'a12')   # fused adapter1+2
    a1, a2 = a12[:f0], a12[f0:]
    a34 = up_conv(jnp.concatenate([x3, x4], axis=0), s3, 'a34')   # fused adapter3+4
    a3, a4 = a34[:f0], a34[f0:]

    # region branch (target resolution = xs[2])
    reg_x = info_block(('rg', 'rr', 'rf'), a2, a3, s2, s3, a4, s4)

    # global branch: conv->GN->ReLU->up2x->conv->GN->ReLU->up2x
    y = up_conv(a4, s4, 'g1')
    y = resize(y, s4, 2 * s4)
    y = up_conv(y, 2 * s4, 'g2')
    glob = resize(y, 2 * s4, 4 * s4)

    # local branch (target resolution = xs[0])
    loc_x = info_block(('lg', 'lr', 'lf'), a0, a1, s0, s1, glob, 4 * s4)

    # head: upsample region output, elementwise product, channel reduction
    reg_up = resize(reg_x, s2, s0)
    pred = jnp.sum(loc_x * reg_up, axis=0, keepdims=True)   # (1, s0*s0)
    out_ref[0] = pred                                       # lane-dense store


# --------------------------------------------------------------------------
# final bilinear upsample kernel (s0 x s0 -> x_size), separable 2-D matmuls
# --------------------------------------------------------------------------

def _final_resize_kernel(p_ref, ry_ref, rxt_ref, o_ref):
    t = jnp.dot(ry_ref[...], p_ref[0], preferred_element_type=jnp.float32)
    o_ref[0] = jnp.dot(t, rxt_ref[...], preferred_element_type=jnp.float32)


# --------------------------------------------------------------------------
# parameter init (synthetic, deterministic) and constant packing
# --------------------------------------------------------------------------

def init_decoder_params(seed, feat):
    rng = np.random.default_rng(seed)
    f0 = feat[0]

    def conv(ci, co, gn):
        p = {'w': (0.1 * rng.standard_normal((co, 9, ci))).astype(np.float32),
             'b': (0.1 * rng.standard_normal((co, 1))).astype(np.float32)}
        if gn:
            p['g'] = (1.0 + 0.1 * rng.standard_normal((co, 1))).astype(np.float32)
            p['be'] = (0.1 * rng.standard_normal((co, 1))).astype(np.float32)
        return p

    P = {}
    for i in range(5):
        P['adapter%d' % i] = conv(feat[i], f0, True)
    for blk in ('region', 'local'):
        P[blk] = {'gconv': conv(f0, f0, True),
                  'res1': conv(f0, f0, False),
                  'res2': conv(f0, f0, False),
                  'fuse': conv(3 * f0, f0, False)}
    P['gb'] = {'c1': conv(f0, 2 * f0, True), 'c2': conv(2 * f0, f0, True)}
    return P


def _fuse_pair(pa, pb):
    """Block-diagonal fusion of two conv(+GN) layers at the same spatial level."""
    coa, _, cia = pa['w'].shape
    cob, _, cib = pb['w'].shape
    w = np.zeros((coa + cob, 9, cia + cib), np.float32)
    w[:coa, :, :cia] = pa['w']
    w[coa:, :, cia:] = pb['w']
    out = {'w': w}
    for k in ('b', 'g', 'be'):
        if k in pa:
            out[k] = np.concatenate([pa[k], pb[k]], axis=0)
    return out


def pack_decoder_consts(P, spatial):
    s0, s1, s2, s3, s4 = spatial
    layers = [
        ('a0', P['adapter0']),
        ('a12', _fuse_pair(P['adapter1'], P['adapter2'])),
        ('a34', _fuse_pair(P['adapter3'], P['adapter4'])),
        ('rg', P['region']['gconv']),
        ('rr', _fuse_pair(P['region']['res1'], P['region']['res2'])),
        ('rf', P['region']['fuse']),
        ('lg', P['local']['gconv']),
        ('lr', _fuse_pair(P['local']['res1'], P['local']['res2'])),
        ('lf', P['local']['fuse']),
        ('g1', P['gb']['c1']),
        ('g2', P['gb']['c2']),
    ]
    weights, vec_rows, vecmap, off = {}, [], {}, 0
    for name, lp in layers:
        co = lp['w'].shape[0]
        weights[name] = jnp.asarray(lp['w'].reshape(co, -1), jnp.bfloat16)
        for kind in ('b', 'g', 'be'):
            if kind in lp:
                vec_rows.append(lp[kind])
                vecmap[(name, kind)] = (off, co)
                off += co
    vecs = jnp.asarray(np.concatenate(vec_rows, axis=0), jnp.float32)   # (N, 1)

    pairs = {(s4, s2), (s3, s2), (s4, 2 * s4), (2 * s4, 4 * s4),
             (4 * s4, s0), (s1, s0), (s2, s0)}
    rs = {'%d_%d' % (a, b): _resize_matrix_padded(a, b) for a, b in pairs if a != b}

    return {'w': weights, 'vec': vecs, 'rs': rs}, vecmap


# --------------------------------------------------------------------------
# forward wrapper
# --------------------------------------------------------------------------

def decoder_apply(params, xs, x_size, feat):
    B = xs[0].shape[0]
    for i, x in enumerate(xs):
        assert x.shape[2] == x.shape[3], "square spatial expected"
        assert x.shape[1] % 8 == 0 and x.shape[1] == feat[i]
    assert feat[0] % 8 == 0
    spatial = tuple(int(x.shape[2]) for x in xs)
    # TODO(synk): fall back to unfused sibling convs if the spatial sizes differ.
    assert spatial[1] == spatial[2] and spatial[3] == spatial[4], \
        "sibling-conv fusion assumes matching spatial sizes"
    s0 = spatial[0]

    # flatten to (B, C, H*W) and zero-pad the lane axis to a multiple of 128
    xs_flat = []
    for x in xs:
        b, c, h, w = x.shape
        xf = x.reshape(b, c, h * w)
        pad = (-(h * w)) % 128
        if pad:
            xf = jnp.pad(xf, ((0, 0), (0, 0), (0, pad)))
        xs_flat.append(xf)

    bundle, vecmap = pack_decoder_consts(params, spatial)
    leaves, treedef = jax.tree_util.tree_flatten(bundle)

    kern = functools.partial(
        _decoder_kernel, treedef=treedef, n_leaves=len(leaves),
        feat=tuple(feat), spatial=spatial, vecmap=vecmap,
        roll_like_jnp=_roll_like_jnp_roll())

    pred_flat = pl.pallas_call(
        kern,
        out_shape=jax.ShapeDtypeStruct((B, 1, s0 * s0), jnp.float32),
        grid=(B,),
        in_specs=([_batch_spec(x.shape[1:]) for x in xs_flat]
                  + [_const_spec(l.shape) for l in leaves]),
        out_specs=_batch_spec((1, s0 * s0)),
        compiler_params=pltpu.CompilerParams(dimension_semantics=("parallel",)),
    )(*xs_flat, *leaves)

    # final bilinear upsample (s0, s0) -> x_size: separable matmuls, tiny constants
    ry = jnp.asarray(_bilinear_matrix_np(x_size[0], s0), jnp.float32)     # (Hout, s0)
    rxt = jnp.asarray(_bilinear_matrix_np(x_size[1], s0).T, jnp.float32)  # (s0, Wout)
    pred2d = pred_flat.reshape(B, s0, s0)   # free, layout-compatible reshape
    pred_up = pl.pallas_call(
        _final_resize_kernel,
        out_shape=jax.ShapeDtypeStruct((B, x_size[0], x_size[1]), jnp.float32),
        grid=(B,),
        in_specs=[_batch_spec((s0, s0)), _const_spec(ry.shape), _const_spec(rxt.shape)],
        out_specs=_batch_spec((x_size[0], x_size[1])),
        compiler_params=pltpu.CompilerParams(dimension_semantics=("parallel",)),
    )(pred2d, ry, rxt)

    pred = pred_up.reshape(B, 1, x_size[0], x_size[1])
    return {'sal': [pred], 'final': pred}


# --------------------------------------------------------------------------
# main
# --------------------------------------------------------------------------

if __name__ == "__main__":
    key = jax.random.PRNGKey(0)

    B = 2
    feat = [8, 16, 16, 32, 32]      # encoder channel widths; feat[0] is the decoder width
    spatial = [32, 16, 16, 8, 8]    # per-level H = W
    x_size = (64, 64)               # final prediction size

    params = init_decoder_params(0, feat)
    xs = [jax.random.normal(jax.random.fold_in(key, 2000 + i),
                            (B, feat[i], spatial[i], spatial[i]), jnp.float32)
          for i in range(5)]

    out = decoder_apply(params, xs, x_size, feat)
    pred = jax.block_until_ready(out['final'])

    assert pred.shape == (B, 1, x_size[0], x_size[1]), pred.shape
    assert bool(jnp.all(jnp.isfinite(pred)))
    print("KERNEL_OK")
</pallas_src>

<mosaic_0001>
module attributes {stable_mosaic.version = 11 : i64} {
  func.func @k(%arg0: memref<8x256xf32, #tpu.memory_space<vmem>>, %arg1: memref<8x256xf32, #tpu.memory_space<vmem>>) attributes {dimension_semantics = [], scalar_prefetch = 0 : i64, scratch_operands = 0 : i64, tpu.core_type = #tpu.core_type<tc>} {
    %c0 = arith.constant 0 : index
    %c0_0 = arith.constant 0 : index
    %0 = vector.load %arg0[%c0, %c0_0] : memref<8x256xf32, #tpu.memory_space<vmem>>, vector<8x256xf32>
    %c1_i32 = arith.constant 1 : i32
    %1 = tpu.dynamic_rotate %0 by %c1_i32 dim 1 : vector<8x256xf32>, i32 -> vector<8x256xf32>
    %c0_1 = arith.constant 0 : index
    %c0_2 = arith.constant 0 : index
    %2 = vector.load %arg1[%c0_1, %c0_2] : memref<8x256xf32, #tpu.memory_space<vmem>>, vector<8x256xf32>
    tpu.vector_store %arg1[%c0_1, %c0_2], %1 {strides = array<i32>} : memref<8x256xf32, #tpu.memory_space<vmem>>, vector<8x256xf32>,
    return
  }
}

</mosaic_0001>

<bundles_post_ra>
// kernel: tpu_custom_call.1
= control target key start
LH: loop header
LB: loop body
LE: loop exit
PB: predicated region body
PF: predicated region fallthrough
CT: control target
= control target key end

     0   :  { %6 = vsyncpa [#allocation3], 0  ;;  %s115_s0 = inlined_call_operand.hbm [shape: f32[8,256], index: 0, kind: input, shape index: {}]   ;;  %s116_s1 = inlined_call_operand.hbm [shape: f32[8,256], index: 1, kind: output, shape index: {}]  }
   0x1   :  { %7 = vsyncpa [#allocation4], 0  ;;  %s96_s6 = smov [#allocation2]  }
   0x2   :  { %s14_s7 = sshll.u32 %s96_s6, 4  ;;  %s15_s7 = int_to_ptr.vmem [resolvable:$true] %s14_s7 }
   0x3   :  { %s60_s8 = scalar_lea.vmem %s15_s7, 256  ;;  %p65_p1 = scmp.lt.s32.totalorder %s15_s7, %s15_s7 }
   0x4   :  { %p61_p0 = scmp.ne.s32.totalorder %s15_s7, %s60_s8  ;;  %p66_p2 = scmp.lt.s32.totalorder %s60_s8, %s60_s8 }
   0x6   :  { %p67_p3 = por %p66_p2, %p65_p1 }
   0x8   :  { %p68_p4 = pnand %p67_p3, %p61_p0 }
   0xa   :  { %71 = shalt.err (!%p68_p4)
}
   0xb   :  { %17 = dma.hbm_to_vmem [thread:$0]  %s115_s0, 256, %s15_s7, [#allocation3]  }
   0xc   :  { %92 = dma.done.wait [#allocation3], 256  }
   0xd   :  { %93 = vsyncadd [#allocation3], 4294967040  ;;  %v21_v0 = vld [vmem:[#allocation2] sm:$0xff]  ;;  %s97_s11 = smov 1   ;;  %v22_v1 = vld [vmem:[#allocation2 + $0x8] sm:$0xff]  ;;  %v27_v2 = vlaneseq  ;;  %s98_s12 = smov [#allocation5]  }
   0xe   :  { %23 = vrot.lane.b32.xlu0 %v21_v0, %s97_s11  ;;  %s40_s13 = sshll.u32 %s98_s12, 4  ;;  %s41_s13 = int_to_ptr.vmem [resolvable:$true] %s40_s13 }
   0xf   :  { %v28_v3 = vand.u32 127, %v27_v2  ;;  %s72_s0 = scalar_lea.vmem %s41_s13, 256  ;;  %p77_p6 = scmp.lt.s32.totalorder %s41_s13, %s41_s13 }
  0x10   :  { %p73_p5 = scmp.ne.s32.totalorder %s41_s13, %s72_s0  ;;  %p78_p7 = scmp.lt.s32.totalorder %s72_s0, %s72_s0 }
  0x11   :  { %vm29_vm0 = vcmp.lt.s32.totalorder %v28_v3, 1 }
  0x12   :  { %25 = vrot.lane.b32.xlu0 %v22_v1, %s97_s11  ;;  %p79_p8 = por %p78_p7, %p77_p6 }
  0x14   :  { %p80_p9 = pnand %p79_p8, %p73_p5 }
  0x80   :  { %v24_v4 = vpop.permute.xlu0 %23 }
  0x84   :  { %v26_v5 = vpop.permute.xlu0 %25 }
  0x85   :  { %v30_v6 = vsel %vm29_vm0, %v24_v4, %v26_v5  ;;  %v31_v7 = vsel %vm29_vm0, %v26_v5, %v24_v4 }
  0x86   :  { %32 = vst [vmem:[#allocation5] sm:$0xff] %v31_v7  ;;  %33 = vst [vmem:[#allocation5 + $0x8] sm:$0xff] %v30_v6 }
  0x87   :  { %83 = shalt.err (!%p80_p9)
}
  0x88   :  { %43 = dma.vmem_to_hbm [thread:$0]  %s41_s13, 256, %s116_s1, [#allocation4]  }
  0x89   :  { %94 = dma.done.wait [#allocation4], 256  }
  0x8a   :  { %95 = vsyncadd [#allocation4], 4294967040 }
  0x8b   :  { %47 = vsyncpa [#allocation3], 1 }
  0x8c   :  { %48 = vsyncpa [#allocation4], 1 }

</bundles_post_ra>
